<compile_context>
chip_gen: v7x
topology: tpu7x:2x2x1
jax: 0.10.0
libtpu: 0.0.40
codegen_flags: <defaults>
</compile_context>

<pallas_src>
import functools

import jax
import jax.numpy as jnp
from jax.experimental import pallas as pl
from jax.experimental.pallas import tpu as pltpu


def _wap_kernel(a_ref, x_ref, o_ref, *, length, width):
    """One grid step: a (block_b, block_h) slab of the problem.

    a_ref: (Bb, L+W-1)       attention slice for this batch block
    x_ref: (Bb, L+W-1, Hb)   conv-output slice (channel dim squeezed away)
    o_ref: (Bb, L, Hb)       pooled output slice
    """
    acc = jnp.zeros(o_ref.shape, jnp.float32)
    # `width` is small and static -> unrolled Python loop; each iteration is a
    # shifted-window load directly from the resident VMEM refs.
    for j in range(width):
        x_j = x_ref[:, pl.ds(j, length), :].astype(jnp.float32)   # (Bb, L, Hb)
        a_j = a_ref[:, pl.ds(j, length)].astype(jnp.float32)      # (Bb, L)
        acc = acc + x_j * a_j[:, :, None]
    o_ref[...] = acc.astype(o_ref.dtype)


def width_ap(x, attention_matrix, *, length, width, block_b=None, block_h=None):
    """Pallas implementation of WidthAP.forward.

    Args:
      x: (B, 1, length + width - 1, H)
      attention_matrix: (B, length + width - 1)
    Returns:
      (B, 1, length, H), same dtype as x (f32 accumulation internally).
    """
    B, C, Lw, H = x.shape
    assert C == 1 and Lw == length + width - 1
    assert attention_matrix.shape == (B, Lw)
    itemsize = jnp.dtype(x.dtype).itemsize

    # ---- block-size selection -------------------------------------------
    # Lane (last) dim: full H for small problems; for large, 128-divisible H,
    # tile in lane-dense multiples of 128 (<= 512) so stores are unmasked vst.
    if block_h is None:
        block_h = H
        if H > 512 and H % 128 == 0:
            bh = 512
            while H % bh != 0:
                bh -= 128
            block_h = bh

    # Batch dim: biggest divisor of B whose double-buffered x + out blocks fit
    # a conservative VMEM budget (safe on v7x's smaller scoped VMEM).  When B
    # is tiled, the batch block becomes the sublane dim of the attention
    # BlockSpec, so keep it a multiple of 8 (else fall back to full B).
    if block_b is None:
        budget = 8 * 1024 * 1024
        per_b = (Lw + length) * block_h * itemsize * 2   # x + out, double-buffered
        max_bb = max(1, budget // max(per_b, 1))
        block_b = B
        if B > max_bb:
            bb = (int(max_bb) // 8) * 8
            while bb >= 8 and B % bb != 0:
                bb -= 8
            if bb >= 8:
                block_b = bb             # else keep full B (still correct)

    grid = (B // block_b, H // block_h)   # (1, 1) for small problems

    flops = 2 * width * B * length * H
    bytes_accessed = itemsize * (B * Lw * H + B * length * H) + 4 * B * Lw

    out3 = pl.pallas_call(
        functools.partial(_wap_kernel, length=length, width=width),
        out_shape=jax.ShapeDtypeStruct((B, length, H), x.dtype),
        grid=grid,
        in_specs=[
            # attention: per-batch-block, full Lw
            pl.BlockSpec((block_b, Lw), lambda b, h: (b, 0)),
            # x: 4-D input, channel dim squeezed out of the kernel ref
            pl.BlockSpec((block_b, pl.Squeezed(), Lw, block_h),
                         lambda b, h: (b, 0, 0, h)),
        ],
        out_specs=pl.BlockSpec((block_b, length, block_h),
                               lambda b, h: (b, 0, h)),
        compiler_params=pltpu.CompilerParams(
            dimension_semantics=("parallel", "parallel")),
        cost_estimate=pl.CostEstimate(
            flops=flops, transcendentals=0, bytes_accessed=bytes_accessed),
    )(attention_matrix, x)

    return out3[:, None, :, :]            # restore channel dim -> (B, 1, L, H)


def width_ap_ref(x, attention_matrix, *, length, width):
    """Pure-JAX reference matching the PyTorch semantics."""
    a = attention_matrix[:, None, :, None]             # (B,1,Lw,1)
    pools = []
    for i in range(length):
        pools.append((x[:, :, i:i + width, :] * a[:, :, i:i + width, :])
                     .sum(axis=2, keepdims=True))
    return jnp.concatenate(pools, axis=2)


if __name__ == "__main__":
    LENGTH, WIDTH = 16, 3
    B, H = 2, 32
    Lw = LENGTH + WIDTH - 1

    key = jax.random.PRNGKey(0)
    kx, ka = jax.random.split(key)
    x = jax.random.normal(kx, (B, 1, Lw, H), dtype=jnp.float32)
    attention_matrix = jax.random.uniform(ka, (B, Lw), dtype=jnp.float32)

    out = width_ap(x, attention_matrix, length=LENGTH, width=WIDTH)
    jax.block_until_ready(out)

    ref = width_ap_ref(x, attention_matrix, length=LENGTH, width=WIDTH)
    assert out.shape == (B, 1, LENGTH, H)
    assert jnp.allclose(out, ref, atol=1e-5, rtol=1e-5)

    print("KERNEL_OK")
</pallas_src>

<mosaic_0001>
module attributes {stable_mosaic.version = 11 : i64} {
  func.func @_wap_kernel(%arg0: i32, %arg1: i32, %arg2: memref<2x18xf32, #tpu.memory_space<vmem>>, %arg3: memref<2x1x18x32xf32, #tpu.memory_space<vmem>>, %arg4: memref<2x16x32xf32, #tpu.memory_space<vmem>>) attributes {dimension_semantics = [#tpu.dimension_semantics<parallel>, #tpu.dimension_semantics<parallel>], iteration_bounds = array<i64: 1, 1>, scalar_prefetch = 0 : i64, scratch_operands = 0 : i64, tpu.core_type = #tpu.core_type<tc>, window_params = [{transform_indices = @transform_0, window_bounds = array<i64: 2, 18>}, {transform_indices = @transform_1, window_bounds = array<i64: 2, 1, 18, 32>}, {transform_indices = @transform_2, window_bounds = array<i64: 2, 16, 32>}]} {
    %cst = arith.constant 0.000000e+00 : f32
    %0 = vector.broadcast %cst : f32 to vector<2x16x32xf32>
    %c0 = arith.constant 0 : index
    %c0_0 = arith.constant 0 : index
    %c0_1 = arith.constant 0 : index
    %c0_2 = arith.constant 0 : index
    %1 = vector.load %arg3[%c0, %c0_0, %c0_1, %c0_2] : memref<2x1x18x32xf32, #tpu.memory_space<vmem>>, vector<2x1x16x32xf32>
    %2 = vector.shape_cast %1 : vector<2x1x16x32xf32> to vector<2x16x32xf32>
    %c0_3 = arith.constant 0 : index
    %c0_4 = arith.constant 0 : index
    %3 = vector.load %arg2[%c0_3, %c0_4] : memref<2x18xf32, #tpu.memory_space<vmem>>, vector<2x16xf32>
    %4 = vector.shape_cast %3 : vector<2x16xf32> to vector<2x16x1xf32>
    %5 = vector.broadcast %4 : vector<2x16x1xf32> to vector<2x16x32xf32>
    %6 = arith.mulf %2, %5 : vector<2x16x32xf32>
    %7 = arith.addf %0, %6 : vector<2x16x32xf32>
    %c0_5 = arith.constant 0 : index
    %c0_6 = arith.constant 0 : index
    %c1 = arith.constant 1 : index
    %c0_7 = arith.constant 0 : index
    %8 = vector.load %arg3[%c0_5, %c0_6, %c1, %c0_7] : memref<2x1x18x32xf32, #tpu.memory_space<vmem>>, vector<2x1x16x32xf32>
    %9 = vector.shape_cast %8 : vector<2x1x16x32xf32> to vector<2x16x32xf32>
    %c0_8 = arith.constant 0 : index
    %c1_9 = arith.constant 1 : index
    %10 = vector.load %arg2[%c0_8, %c1_9] : memref<2x18xf32, #tpu.memory_space<vmem>>, vector<2x16xf32>
    %11 = vector.shape_cast %10 : vector<2x16xf32> to vector<2x16x1xf32>
    %12 = vector.broadcast %11 : vector<2x16x1xf32> to vector<2x16x32xf32>
    %13 = arith.mulf %9, %12 : vector<2x16x32xf32>
    %14 = arith.addf %7, %13 : vector<2x16x32xf32>
    %c0_10 = arith.constant 0 : index
    %c0_11 = arith.constant 0 : index
    %c2 = arith.constant 2 : index
    %c0_12 = arith.constant 0 : index
    %15 = vector.load %arg3[%c0_10, %c0_11, %c2, %c0_12] : memref<2x1x18x32xf32, #tpu.memory_space<vmem>>, vector<2x1x16x32xf32>
    %16 = vector.shape_cast %15 : vector<2x1x16x32xf32> to vector<2x16x32xf32>
    %c0_13 = arith.constant 0 : index
    %c2_14 = arith.constant 2 : index
    %17 = vector.load %arg2[%c0_13, %c2_14] : memref<2x18xf32, #tpu.memory_space<vmem>>, vector<2x16xf32>
    %18 = vector.shape_cast %17 : vector<2x16xf32> to vector<2x16x1xf32>
    %19 = vector.broadcast %18 : vector<2x16x1xf32> to vector<2x16x32xf32>
    %20 = arith.mulf %16, %19 : vector<2x16x32xf32>
    %21 = arith.addf %14, %20 : vector<2x16x32xf32>
    %c0_15 = arith.constant 0 : index
    %c0_16 = arith.constant 0 : index
    %c0_17 = arith.constant 0 : index
    %22 = vector.load %arg4[%c0_15, %c0_16, %c0_17] : memref<2x16x32xf32, #tpu.memory_space<vmem>>, vector<2x16x32xf32>
    tpu.vector_store %arg4[%c0_15, %c0_16, %c0_17], %21 {strides = array<i32>} : memref<2x16x32xf32, #tpu.memory_space<vmem>>, vector<2x16x32xf32>,
    return
  }
  func.func @transform_0(%arg0: i32, %arg1: i32) -> (i32, i32) {
    %c0_i32 = arith.constant 0 : i32
    %c0_i32_0 = arith.constant 0 : i32
    return %arg0, %c0_i32 : i32, i32
  }
  func.func @transform_1(%arg0: i32, %arg1: i32) -> (i32, i32, i32, i32) {
    %c0_i32 = arith.constant 0 : i32
    %c0_i32_0 = arith.constant 0 : i32
    %c0_i32_1 = arith.constant 0 : i32
    return %arg0, %c0_i32, %c0_i32_0, %arg1 : i32, i32, i32, i32
  }
  func.func @transform_2(%arg0: i32, %arg1: i32) -> (i32, i32, i32) {
    %c0_i32 = arith.constant 0 : i32
    %c0_i32_0 = arith.constant 0 : i32
    return %arg0, %c0_i32, %arg1 : i32, i32, i32
  }
}

</mosaic_0001>

<bundles_post_ra>
// kernel: tpu_custom_call.1
= control target key start
LH: loop header
LB: loop body
LE: loop exit
PB: predicated region body
PF: predicated region fallthrough
CT: control target
= control target key end

     0   :  { %v17_v0 = vlaneseq  ;;  %s224_s0 = inlined_call_operand.vmem [shape: f32[2,18], index: 0, kind: input, shape index: {}]   ;;  %s225_s1 = inlined_call_operand.vmem [shape: f32[2,1,18,32], index: 1, kind: input, shape index: {}]   ;;  %s226_s2 = inlined_call_operand.hbm [shape: f32[2,16,32], index: 2, kind: output, shape index: {}]  }
   0x2   :  { %v18_v1 = vshrl.u32 %v17_v0, 7 }
   0x3   :  { %7 = vsyncpa [#allocation3], 0  ;;  %v16_v2 = vld [vmem:[%s224_s0] sm:$0x3]  ;;  %v48_v13 = vld [vmem:[%s225_s1 + $0x9] sm:$0xff]  ;;  %vm103_vm0 = vcmask 261120  }
   0x4   :  { %v30_v3 = vsub.s32 1, %v18_v1  ;;  %v19_v4 = vsub.s32 0, %v18_v1  ;;  %v47_v14 = vld [vmem:[%s225_s1 + $0x1] sm:$0xff]  ;;  %v49_v24 = vld [vmem:[%s225_s1 + $0x19] sm:$0xff]  ;;  %v76_v25 = vld [vmem:[%s225_s1 + $0xa] sm:$0xff]  ;;  %s151_s6 = smov [#allocation2]  }
   0x5   :  { %v12_v15 = vld [vmem:[%s225_s1] sm:$0xff]  ;;  %v13_v16 = vld [vmem:[%s225_s1 + $0x8] sm:$0xff]  ;;  %v14_v27 = vld [vmem:[%s225_s1 + $0x18] sm:$0xff]  ;;  %s113_s7 = sshll.u32 %s151_s6, 4  ;;  %s114_s7 = int_to_ptr.vmem [resolvable:$true] %s113_s7 }
   0x6   :  { %v31_v5 = vrot.slane %v16_v2, %v30_v3  ;;  %v20_v6 = vrot.slane %v16_v2, %v19_v4  ;;  %v50_v21 = vld [vmem:[%s225_s1 + $0x21] sm:$0xff]  ;;  %p132_p1 = scmp.lt.s32.totalorder %s114_s7, %s114_s7 }
   0x7   :  { %v75_v26 = vld [vmem:[%s225_s1 + $0x2] sm:$0xff]  ;;  %v77_v38 = vld [vmem:[%s225_s1 + $0x1a] sm:$0xff] }
   0x8   :  { %33 = vbcast.lane.b32.xlu1 %v31_v5, 256  ;;  %22 = vbcast.lane.b32.xlu0 %v20_v6, 256  ;;  %v15_v28 = vld [vmem:[%s225_s1 + $0x20] sm:$0xff] }
   0x9   :  { %v78_v37 = vld [vmem:[%s225_s1 + $0x22] sm:$0xff]  ;;  %s127_s1 = scalar_lea.vmem %s114_s7, 512 }
   0xa   :  { %p128_p0 = scmp.ne.s32.totalorder %s114_s7, %s127_s1  ;;  %p133_p2 = scmp.lt.s32.totalorder %s127_s1, %s127_s1 }
   0xc   :  { %37 = vbcast.lane.b32.xlu1 %v31_v5, 264  ;;  %26 = vbcast.lane.b32.xlu0 %v20_v6, 264  ;;  %p134_p3 = por %p133_p2, %p132_p1 }
   0xe   :  { %p135_p4 = pnand %p134_p3, %p128_p0 }
  0x10   :  { %57 = vbcast.lane.b32.xlu1 %v20_v6, 265  ;;  %53 = vbcast.lane.b32.xlu0 %v20_v6, 257 }
  0x14   :  { %65 = vbcast.lane.b32.xlu1 %v31_v5, 265  ;;  %61 = vbcast.lane.b32.xlu0 %v31_v5, 257 }
  0x18   :  { %85 = vbcast.lane.b32.xlu1 %v20_v6, 266  ;;  %81 = vbcast.lane.b32.xlu0 %v20_v6, 258 }
  0x1c   :  { %93 = vbcast.lane.b32.xlu1 %v31_v5, 266  ;;  %89 = vbcast.lane.b32.xlu0 %v31_v5, 258 }
  0x7a   :  { %v34_v7 = vpop.permute.xlu1 %33  ;;  %v23_v8 = vpop.permute.xlu0 %22 }
  0x7b   :  { %v39_v22 = vmul.f32 %v23_v8, %v12_v15  ;;  %v41_v39 = vmul.f32 %v34_v7, %v14_v27 }
  0x7e   :  { %v38_v9 = vpop.permute.xlu1 %37  ;;  %v27_v10 = vpop.permute.xlu0 %26 }
  0x7f   :  { %v40_v23 = vmul.f32 %v27_v10, %v13_v16  ;;  %v42_v40 = vmul.f32 %v38_v9, %v15_v28 }
  0x82   :  { %v58_v11 = vpop.permute.xlu1 %57  ;;  %v54_v12 = vpop.permute.xlu0 %53 }
  0x83   :  { %v68_v17 = vmul.f32 %v58_v11, %v48_v13  ;;  %v67_v18 = vmul.f32 %v54_v12, %v47_v14 }
  0x85   :  { %v72_v29 = vadd.f32 %v68_v17, %v40_v23  ;;  %v71_v30 = vadd.f32 %v67_v18, %v39_v22 }
  0x86   :  { %v66_v19 = vpop.permute.xlu1 %65  ;;  %v62_v20 = vpop.permute.xlu0 %61 }
  0x87   :  { %v70_v33 = vmul.f32 %v66_v19, %v50_v21  ;;  %v69_v34 = vmul.f32 %v62_v20, %v49_v24 }
  0x89   :  { %v74_v45 = vadd.f32 %v70_v33, %v42_v40  ;;  %v73_v46 = vadd.f32 %v69_v34, %v41_v39 }
  0x8a   :  { %v86_v31 = vpop.permute.xlu1 %85  ;;  %v82_v32 = vpop.permute.xlu0 %81 }
  0x8b   :  { %v96_v35 = vmul.f32 %v86_v31, %v76_v25  ;;  %v95_v36 = vmul.f32 %v82_v32, %v75_v26 }
  0x8d   :  { %v100_v41 = vadd.f32 %v96_v35, %v72_v29  ;;  %v99_v42 = vadd.f32 %v95_v36, %v71_v30 }
  0x8e   :  { %v94_v43 = vpop.permute.xlu1 %93  ;;  %v90_v44 = vpop.permute.xlu0 %89 }
  0x8f   :  { %105 = vst.msk [vmem:[#allocation2 + $0x8] sm:$0xff] %vm103_vm0, %v100_v41  ;;  %104 = vst.msk [vmem:[#allocation2] sm:$0xff] %vm103_vm0, %v99_v42  ;;  %v98_v47 = vmul.f32 %v94_v43, %v78_v37  ;;  %v97_v48 = vmul.f32 %v90_v44, %v77_v38 }
  0x91   :  { %v102_v49 = vadd.f32 %v98_v47, %v74_v45  ;;  %v101_v50 = vadd.f32 %v97_v48, %v73_v46 }
  0x93   :  { %107 = vst.msk [vmem:[#allocation2 + $0x18] sm:$0xff] %vm103_vm0, %v102_v49  ;;  %106 = vst.msk [vmem:[#allocation2 + $0x10] sm:$0xff] %vm103_vm0, %v101_v50 }
  0x94   :  { %138 = shalt.err (!%p135_p4)
}
  0x95   :  { %s139_s10 = scalar_lea.hbm %s226_s2, 512 }
  0x96   :  { %p140_p5 = scmp.ne.s32.totalorder %s226_s2, %s139_s10  ;;  %p143_p6 = scmp.lt.u32.totalorder %s139_s10, %s226_s2 }
  0x98   :  { %p145_p7 = pnand %p143_p6, %p140_p5 }
  0x9a   :  { %148 = shalt.err (!%p145_p7)
}
  0x9b   :  { %s152_s14 = smov 128   ;;  %s153_s15 = smov 8  }
  0x9c   :  { %119 = dma.vmem_to_hbm [thread:$0]  %s114_s7, 512, %s226_s2, [#allocation3], %s152_s14, %s152_s14, %s153_s15  }
  0x9d   :  { %149 = dma.done.wait [#allocation3], 512  }
  0x9e   :  { %150 = vsyncadd [#allocation3], 4294966784 }
  0x9f   :  { %123 = vsyncpa [#allocation3], 1 }

</bundles_post_ra>
